<compile_context>
chip_gen: v7x
topology: tpu7x:2x2x1
jax: 0.10.0
libtpu: 0.0.40
codegen_flags: <defaults>
</compile_context>

<pallas_src>
import functools
import math

import jax
import jax.numpy as jnp
from jax import lax
from jax.experimental import pallas as pl
from jax.experimental.pallas import tpu as pltpu


# ----------------------------------------------------------------------------
# helpers
# ----------------------------------------------------------------------------
def _layernorm(x, gamma, beta, eps=1e-5):
    mean = jnp.mean(x, axis=-1, keepdims=True)
    var = jnp.mean((x - mean) ** 2, axis=-1, keepdims=True)
    return (x - mean) * lax.rsqrt(var + eps) * gamma + beta


# ----------------------------------------------------------------------------
# Fused encoder kernel (whole batch in one invocation):
#   comb_proj -> folded q/k/v projections -> last-query multi-head attention
#   -> out_proj -> residual -> ln1 -> FFN -> residual(embed) -> ln2
# ----------------------------------------------------------------------------
def _encoder_kernel(ec_ref,
                    cw_ref, cb_ref,
                    wq_ref, bq_ref, wk_ref, bk_ref, wv_ref, bv_ref,
                    wo_ref, bo_ref,
                    hm_ref, hmt_ref,
                    g1_ref, be1_ref,
                    w1_ref, b1_ref, w2_ref, b2_ref,
                    g2_ref, be2_ref,
                    o_ref, *, n_heads, batch, seq):
    B, S = batch, seq
    f32 = jnp.float32
    bf16 = jnp.bfloat16

    # comb_proj (fused into this kernel): embed = cat_embed @ Wc + bc
    x = jnp.dot(ec_ref[...].astype(bf16), cw_ref[...],
                preferred_element_type=f32) + cb_ref[...]                  # (B*S, H) f32
    H = x.shape[-1]
    xb = x.astype(bf16)

    # folded key/value projections (key/value linear + MHA in-proj fused offline)
    kp = jnp.dot(xb, wk_ref[...], preferred_element_type=f32) + bk_ref[...]   # (B*S, H)
    vp = jnp.dot(xb, wv_ref[...], preferred_element_type=f32) + bv_ref[...]   # (B*S, H)

    # folded (and 1/sqrt(dh)-scaled) query projection on the LAST position only
    x_last = x.reshape(B, S, H)[:, S - 1, :]                                  # (B, H)
    qp = jnp.dot(x_last.astype(bf16), wq_ref[...],
                 preferred_element_type=f32) + bq_ref[...]                    # (B, H)

    # head-batched attention (single query position per batch), scratch-free:
    #   scores[b, s, h] = sum_{j in head h} kp[b, s, j] * qp[b, j]
    prod = (kp.reshape(B, S, H) * qp.reshape(B, 1, H)).reshape(B * S, H)      # f32
    scores = jnp.dot(prod, hm_ref[...], preferred_element_type=f32)           # (B*S, nh)
    s3 = scores.reshape(B, S, n_heads)
    s3 = s3 - jnp.max(s3, axis=1, keepdims=True)
    e = jnp.exp(s3)
    probs = e / jnp.sum(e, axis=1, keepdims=True)                             # (B, S, nh)
    # expand per-head probabilities back to the hidden axis and contract over S
    pe = jnp.dot(probs.reshape(B * S, n_heads), hmt_ref[...],
                 preferred_element_type=f32)                                  # (B*S, H)
    ctx = jnp.sum((pe * vp).reshape(B, S, H), axis=1)                         # (B, H)
    attn = jnp.dot(ctx.astype(bf16), wo_ref[...],
                   preferred_element_type=f32) + bo_ref[...]                  # (B, H)

    # residual (attention output broadcast over the sequence) + ln1
    y = (x.reshape(B, S, H) + attn.reshape(B, 1, H)).reshape(B * S, H)
    y = _layernorm(y, g1_ref[...], be1_ref[...])

    # FFN: relu(y@W1+b1)@W2+b2
    f = jnp.maximum(jnp.dot(y.astype(bf16), w1_ref[...],
                            preferred_element_type=f32) + b1_ref[...], 0.0)
    f = jnp.dot(f.astype(bf16), w2_ref[...],
                preferred_element_type=f32) + b2_ref[...]

    # residual from the *original* embed (LastQuery quirk), then ln2
    z = _layernorm(x + f, g2_ref[...], be2_ref[...])
    o_ref[...] = z.astype(o_ref.dtype)


def encoder(embed_cat, params, *, n_heads, batch, seq):
    """embed_cat: (B*S, 4*(H//3)) batch-major.  Returns (B*S, H) f32."""
    BS, C4 = embed_cat.shape
    H = params["comb_w"].shape[1]
    f32, bf16 = jnp.float32, jnp.bfloat16
    dh = H // n_heads
    scale = 1.0 / math.sqrt(dh)

    # --- offline algebraic folding: (x@Wa + ba)@Wb + bb == x@(Wa@Wb) + (ba@Wb + bb)
    wq_f = (params["wq"] @ params["attn_wiq"]) * scale
    bq_f = (params["bq"] @ params["attn_wiq"] + params["attn_biq"]) * scale
    wk_f = params["wk"] @ params["attn_wik"]
    bk_f = params["bk"] @ params["attn_wik"] + params["attn_bik"]
    wv_f = params["wv"] @ params["attn_wiv"]
    bv_f = params["bv"] @ params["attn_wiv"] + params["attn_biv"]

    # head-selection mask: hm[j, h] = 1 if hidden feature j belongs to head h
    hm = (jnp.arange(H)[:, None] // dh == jnp.arange(n_heads)[None, :]).astype(f32)
    hmt = hm.T

    def row(v):  # biases / LN params as (1, H) f32 rows
        return v.reshape(1, -1).astype(f32)

    weights = [
        params["comb_w"].astype(bf16), row(params["comb_b"]),
        wq_f.astype(bf16), row(bq_f),
        wk_f.astype(bf16), row(bk_f),
        wv_f.astype(bf16), row(bv_f),
        params["attn_wo"].astype(bf16), row(params["attn_bo"]),
        hm, hmt,
        row(params["ln1_g"]), row(params["ln1_b"]),
        params["ffn_w1"].astype(bf16), row(params["ffn_b1"]),
        params["ffn_w2"].astype(bf16), row(params["ffn_b2"]),
        row(params["ln2_g"]), row(params["ln2_b"]),
    ]
    # TODO(synk): at production H, tile the FFN weights over N / raise
    # vmem_limit_bytes so the weight-resident layout still fits v7x's 64 MiB.
    wspecs = [pl.BlockSpec(w.shape, lambda i: (0, 0)) for w in weights]

    return pl.pallas_call(
        functools.partial(_encoder_kernel, n_heads=n_heads, batch=batch, seq=seq),
        out_shape=jax.ShapeDtypeStruct((BS, H), jnp.float32),
        grid=(1,),
        in_specs=[pl.BlockSpec((BS, C4), lambda i: (0, 0))] + wspecs,
        out_specs=pl.BlockSpec((BS, H), lambda i: (0, 0)),
        compiler_params=pltpu.CompilerParams(dimension_semantics=("arbitrary",)),
    )(embed_cat, *weights)


# ----------------------------------------------------------------------------
# LSTM layer (one batch element per grid step) with fused fc + sigmoid.
# PyTorch gate order: i, f, g, o ; c' = f*c + i*g ; h' = o*tanh(c')
# ----------------------------------------------------------------------------
def _lstm_fc_kernel(x_ref, wih_ref, whh_ref, b_ref, fcw_ref, fcb_ref,
                    h_out_ref, preds_ref, *, hidden, seq_len):
    H, S = hidden, seq_len
    f32, bf16 = jnp.float32, jnp.bfloat16

    # hoist the input projection out of the recurrence: a single (S, 4H) matmul
    xg = jnp.dot(x_ref[...].astype(bf16), wih_ref[...],
                 preferred_element_type=f32) + b_ref[...]                 # (S, 4H)
    # one-time per-gate slices (not per-timestep)
    xi = xg[:, 0 * H:1 * H]
    xf = xg[:, 1 * H:2 * H]
    xc = xg[:, 2 * H:3 * H]
    xo = xg[:, 3 * H:4 * H]
    # per-gate recurrent weights: keeps the serial path lane-dense
    w_i = whh_ref[0]
    w_f = whh_ref[1]
    w_c = whh_ref[2]
    w_o = whh_ref[3]

    h = jnp.zeros((1, H), f32)
    c = jnp.zeros((1, H), f32)
    # fully unrolled recurrence (S small & static) so the scheduler can overlap
    # the MXU pushes with the VPU/EUP gate math and the per-step stores.
    for t in range(S):
        hb = h.astype(bf16)
        gi = jax.nn.sigmoid(xi[t:t + 1, :] + jnp.dot(hb, w_i, preferred_element_type=f32))
        gf = jax.nn.sigmoid(xf[t:t + 1, :] + jnp.dot(hb, w_f, preferred_element_type=f32))
        gc = jnp.tanh(xc[t:t + 1, :] + jnp.dot(hb, w_c, preferred_element_type=f32))
        go = jax.nn.sigmoid(xo[t:t + 1, :] + jnp.dot(hb, w_o, preferred_element_type=f32))
        c = gf * c + gi * gc
        h = go * jnp.tanh(c)
        h_out_ref[t:t + 1, :] = h.astype(h_out_ref.dtype)

    # fused fc + sigmoid on the whole hidden slab of this batch element
    h_all = h_out_ref[...].astype(f32)                                     # (S, H)
    logits = jnp.dot(h_all, fcw_ref[...], preferred_element_type=f32) + fcb_ref[...]
    preds_ref[...] = jax.nn.sigmoid(logits).astype(preds_ref.dtype)


def lstm_stack_fc(x, lstm_params, fc_w, fc_b, *, batch, seq):
    """x: (B*S, H) batch-major f32.  Returns preds (B, S)."""
    BS, H = x.shape
    B, S = batch, seq
    fcw = fc_w.astype(jnp.float32)
    fcb = fc_b.reshape(1, 1).astype(jnp.float32)

    preds = None
    for (wih, whh4, b) in lstm_params:
        x, preds = pl.pallas_call(
            functools.partial(_lstm_fc_kernel, hidden=H, seq_len=S),
            out_shape=(jax.ShapeDtypeStruct((BS, H), jnp.float32),
                       jax.ShapeDtypeStruct((BS, 1), jnp.float32)),
            grid=(B,),
            in_specs=[
                pl.BlockSpec((S, H), lambda i: (i, 0)),           # this batch's rows
                pl.BlockSpec((H, 4 * H), lambda i: (0, 0)),
                pl.BlockSpec((4, H, H), lambda i: (0, 0, 0)),
                pl.BlockSpec((1, 4 * H), lambda i: (0, 0)),
                pl.BlockSpec((H, 1), lambda i: (0, 0)),
                pl.BlockSpec((1, 1), lambda i: (0, 0)),
            ],
            out_specs=(pl.BlockSpec((S, H), lambda i: (i, 0)),
                       pl.BlockSpec((S, 1), lambda i: (i, 0))),
            compiler_params=pltpu.CompilerParams(dimension_semantics=("parallel",)),
        )(x,
          wih.astype(jnp.bfloat16),
          whh4.astype(jnp.bfloat16),
          b.reshape(1, 4 * H).astype(jnp.float32),
          fcw, fcb)
    return preds.reshape(B, S)   # batch-major rows -> (B, S), no transpose needed


# ----------------------------------------------------------------------------
# Parameter init (deterministic, synthetic)
# ----------------------------------------------------------------------------
def init_params(key, H, n_layers, n_test, n_questions, n_tag):
    hd3 = H // 3
    ks = iter(jax.random.split(key, 64))

    def nrm(shape, scale=0.1):
        return scale * jax.random.normal(next(ks), shape, jnp.float32)

    p = {}
    p["emb_interaction"] = nrm((3, hd3))
    p["emb_test"] = nrm((n_test + 1, hd3))
    p["emb_question"] = nrm((n_questions + 1, hd3))
    p["emb_tag"] = nrm((n_tag + 1, hd3))
    # NOTE: embedding_position exists in __init__ but is unused in forward().
    p["comb_w"] = nrm((4 * hd3, H)); p["comb_b"] = nrm((H,))
    for name in ("q", "k", "v"):
        p[f"w{name}"] = nrm((H, H)); p[f"b{name}"] = nrm((H,))
    for name in ("iq", "ik", "iv", "o"):   # MHA in_proj (split) + out_proj
        p[f"attn_w{name}"] = nrm((H, H)); p[f"attn_b{name}"] = nrm((H,))
    p["ln1_g"] = jnp.ones((H,), jnp.float32); p["ln1_b"] = jnp.zeros((H,), jnp.float32)
    p["ln2_g"] = jnp.ones((H,), jnp.float32); p["ln2_b"] = jnp.zeros((H,), jnp.float32)
    p["ffn_w1"] = nrm((H, H)); p["ffn_b1"] = nrm((H,))
    p["ffn_w2"] = nrm((H, H)); p["ffn_b2"] = nrm((H,))
    p["lstm"] = []
    for _ in range(n_layers):
        wih = nrm((H, 4 * H))       # W_ih^T, gates stacked [i, f, g, o]
        whh = nrm((4, H, H))        # per-gate W_hh^T, stacked [i, f, g, o]
        b = nrm((4 * H,))           # b_ih + b_hh combined
        p["lstm"].append((wih, whh, b))
    p["fc_w"] = nrm((H, 1)); p["fc_b"] = nrm((1,))
    return p


# ----------------------------------------------------------------------------
# Full forward (mirrors LastQuery.forward)
# ----------------------------------------------------------------------------
def last_query_forward(p, inputs, *, n_heads):
    test, question, tag, _, mask, interaction, index = inputs
    B, S = interaction.shape

    # embedding lookups + concat (glue), flattened batch-major
    e_i = jnp.take(p["emb_interaction"], interaction, axis=0)
    e_t = jnp.take(p["emb_test"], test, axis=0)
    e_q = jnp.take(p["emb_question"], question, axis=0)
    e_g = jnp.take(p["emb_tag"], tag, axis=0)
    embed_cat = jnp.concatenate([e_i, e_t, e_q, e_g], axis=2).reshape(B * S, -1)

    # fused comb_proj + attention block + FFN + layernorms (single pallas_call)
    enc = encoder(embed_cat, p, n_heads=n_heads, batch=B, seq=S)    # (B*S, H)

    # LSTM stack (grid over batch, parallel) with the final fc + sigmoid fused
    preds = lstm_stack_fc(enc, p["lstm"], p["fc_w"], p["fc_b"], batch=B, seq=S)
    return preds                                                    # (B, S)


# ----------------------------------------------------------------------------
if __name__ == "__main__":
    B, S, H = 2, 8, 32          # batch, max_seq_len, hidden_dim
    n_heads = 2
    n_layers = 1
    n_test, n_questions, n_tag = 5, 7, 4

    key = jax.random.PRNGKey(0)
    kp, k1, k2, k3, k4 = jax.random.split(key, 5)

    params = init_params(kp, H, n_layers, n_test, n_questions, n_tag)

    test = jax.random.randint(k1, (B, S), 0, n_test + 1)
    question = jax.random.randint(k2, (B, S), 0, n_questions + 1)
    tag = jax.random.randint(k3, (B, S), 0, n_tag + 1)
    interaction = jax.random.randint(k4, (B, S), 0, 3)
    mask = jnp.ones((B, S), jnp.float32)        # unused by forward (matches PyTorch)
    index = jnp.zeros((B,), jnp.int32)          # unused by forward (matches PyTorch)

    inputs = (test, question, tag, None, mask, interaction, index)
    preds = last_query_forward(params, inputs, n_heads=n_heads)
    preds = jax.block_until_ready(preds)

    assert preds.shape == (B, S), preds.shape
    assert bool(jnp.all(jnp.isfinite(preds)))
    print("KERNEL_OK")
</pallas_src>

<mosaic_0001>
module attributes {stable_mosaic.version = 11 : i64} {
  func.func @_encoder_kernel(%arg0: i32, %arg1: memref<16x40xf32, #tpu.memory_space<vmem>>, %arg2: memref<40x32xbf16, #tpu.memory_space<vmem>>, %arg3: memref<1x32xf32, #tpu.memory_space<vmem>>, %arg4: memref<32x32xbf16, #tpu.memory_space<vmem>>, %arg5: memref<1x32xf32, #tpu.memory_space<vmem>>, %arg6: memref<32x32xbf16, #tpu.memory_space<vmem>>, %arg7: memref<1x32xf32, #tpu.memory_space<vmem>>, %arg8: memref<32x32xbf16, #tpu.memory_space<vmem>>, %arg9: memref<1x32xf32, #tpu.memory_space<vmem>>, %arg10: memref<32x32xbf16, #tpu.memory_space<vmem>>, %arg11: memref<1x32xf32, #tpu.memory_space<vmem>>, %arg12: memref<32x2xf32, #tpu.memory_space<vmem>>, %arg13: memref<2x32xf32, #tpu.memory_space<vmem>>, %arg14: memref<1x32xf32, #tpu.memory_space<vmem>>, %arg15: memref<1x32xf32, #tpu.memory_space<vmem>>, %arg16: memref<32x32xbf16, #tpu.memory_space<vmem>>, %arg17: memref<1x32xf32, #tpu.memory_space<vmem>>, %arg18: memref<32x32xbf16, #tpu.memory_space<vmem>>, %arg19: memref<1x32xf32, #tpu.memory_space<vmem>>, %arg20: memref<1x32xf32, #tpu.memory_space<vmem>>, %arg21: memref<1x32xf32, #tpu.memory_space<vmem>>, %arg22: memref<16x32xf32, #tpu.memory_space<vmem>>) attributes {dimension_semantics = [#tpu.dimension_semantics<arbitrary>], iteration_bounds = array<i64: 1>, scalar_prefetch = 0 : i64, scratch_operands = 0 : i64, tpu.core_type = #tpu.core_type<tc>, window_params = [{pipeline_mode = #tpu.pipeline_mode<synchronous>, transform_indices = @transform_0, window_bounds = array<i64: 16, 40>}, {pipeline_mode = #tpu.pipeline_mode<synchronous>, transform_indices = @transform_1, window_bounds = array<i64: 40, 32>}, {pipeline_mode = #tpu.pipeline_mode<synchronous>, transform_indices = @transform_2, window_bounds = array<i64: 1, 32>}, {pipeline_mode = #tpu.pipeline_mode<synchronous>, transform_indices = @transform_3, window_bounds = array<i64: 32, 32>}, {pipeline_mode = #tpu.pipeline_mode<synchronous>, transform_indices = @transform_4, window_bounds = array<i64: 1, 32>}, {pipeline_mode = #tpu.pipeline_mode<synchronous>, transform_indices = @transform_5, window_bounds = array<i64: 32, 32>}, {pipeline_mode = #tpu.pipeline_mode<synchronous>, transform_indices = @transform_6, window_bounds = array<i64: 1, 32>}, {pipeline_mode = #tpu.pipeline_mode<synchronous>, transform_indices = @transform_7, window_bounds = array<i64: 32, 32>}, {pipeline_mode = #tpu.pipeline_mode<synchronous>, transform_indices = @transform_8, window_bounds = array<i64: 1, 32>}, {pipeline_mode = #tpu.pipeline_mode<synchronous>, transform_indices = @transform_9, window_bounds = array<i64: 32, 32>}, {pipeline_mode = #tpu.pipeline_mode<synchronous>, transform_indices = @transform_10, window_bounds = array<i64: 1, 32>}, {pipeline_mode = #tpu.pipeline_mode<synchronous>, transform_indices = @transform_11, window_bounds = array<i64: 32, 2>}, {pipeline_mode = #tpu.pipeline_mode<synchronous>, transform_indices = @transform_12, window_bounds = array<i64: 2, 32>}, {pipeline_mode = #tpu.pipeline_mode<synchronous>, transform_indices = @transform_13, window_bounds = array<i64: 1, 32>}, {pipeline_mode = #tpu.pipeline_mode<synchronous>, transform_indices = @transform_14, window_bounds = array<i64: 1, 32>}, {pipeline_mode = #tpu.pipeline_mode<synchronous>, transform_indices = @transform_15, window_bounds = array<i64: 32, 32>}, {pipeline_mode = #tpu.pipeline_mode<synchronous>, transform_indices = @transform_16, window_bounds = array<i64: 1, 32>}, {pipeline_mode = #tpu.pipeline_mode<synchronous>, transform_indices = @transform_17, window_bounds = array<i64: 32, 32>}, {pipeline_mode = #tpu.pipeline_mode<synchronous>, transform_indices = @transform_18, window_bounds = array<i64: 1, 32>}, {pipeline_mode = #tpu.pipeline_mode<synchronous>, transform_indices = @transform_19, window_bounds = array<i64: 1, 32>}, {pipeline_mode = #tpu.pipeline_mode<synchronous>, transform_indices = @transform_20, window_bounds = array<i64: 1, 32>}, {pipeline_mode = #tpu.pipeline_mode<synchronous>, transform_indices = @transform_21, window_bounds = array<i64: 16, 32>}]} {
    %c0 = arith.constant 0 : index
    %c0_0 = arith.constant 0 : index
    %0 = vector.load %arg1[%c0, %c0_0] : memref<16x40xf32, #tpu.memory_space<vmem>>, vector<16x40xf32>
    %1 = arith.truncf %0 : vector<16x40xf32> to vector<16x40xbf16>
    %c0_1 = arith.constant 0 : index
    %c0_2 = arith.constant 0 : index
    %2 = vector.load %arg2[%c0_1, %c0_2] : memref<40x32xbf16, #tpu.memory_space<vmem>>, vector<40x32xbf16>
    %cst = arith.constant dense<0.000000e+00> : vector<16x32xf32>
    %3 = tpu.matmul %1, %2, %cst {dimension_numbers = #tpu.dot_dimension_numbers<[1], [0], [0], [1], [0, 0, 1, 1], [], []>} : vector<16x40xbf16>, vector<40x32xbf16>, vector<16x32xf32> -> vector<16x32xf32>
    %c0_3 = arith.constant 0 : index
    %c0_4 = arith.constant 0 : index
    %4 = vector.load %arg3[%c0_3, %c0_4] : memref<1x32xf32, #tpu.memory_space<vmem>>, vector<1x32xf32>
    %5 = vector.broadcast %4 : vector<1x32xf32> to vector<16x32xf32>
    %6 = arith.addf %3, %5 : vector<16x32xf32>
    %7 = arith.truncf %6 : vector<16x32xf32> to vector<16x32xbf16>
    %c0_5 = arith.constant 0 : index
    %c0_6 = arith.constant 0 : index
    %8 = vector.load %arg6[%c0_5, %c0_6] : memref<32x32xbf16, #tpu.memory_space<vmem>>, vector<32x32xbf16>
    %cst_7 = arith.constant dense<0.000000e+00> : vector<16x32xf32>
    %9 = tpu.matmul %7, %8, %cst_7 {dimension_numbers = #tpu.dot_dimension_numbers<[1], [0], [0], [1], [0, 0, 1, 1], [], []>} : vector<16x32xbf16>, vector<32x32xbf16>, vector<16x32xf32> -> vector<16x32xf32>
    %c0_8 = arith.constant 0 : index
    %c0_9 = arith.constant 0 : index
    %10 = vector.load %arg7[%c0_8, %c0_9] : memref<1x32xf32, #tpu.memory_space<vmem>>, vector<1x32xf32>
    %11 = vector.broadcast %10 : vector<1x32xf32> to vector<16x32xf32>
    %12 = arith.addf %9, %11 : vector<16x32xf32>
    %c0_10 = arith.constant 0 : index
    %c0_11 = arith.constant 0 : index
    %13 = vector.load %arg8[%c0_10, %c0_11] : memref<32x32xbf16, #tpu.memory_space<vmem>>, vector<32x32xbf16>
    %cst_12 = arith.constant dense<0.000000e+00> : vector<16x32xf32>
    %14 = tpu.matmul %7, %13, %cst_12 {dimension_numbers = #tpu.dot_dimension_numbers<[1], [0], [0], [1], [0, 0, 1, 1], [], []>} : vector<16x32xbf16>, vector<32x32xbf16>, vector<16x32xf32> -> vector<16x32xf32>
    %c0_13 = arith.constant 0 : index
    %c0_14 = arith.constant 0 : index
    %15 = vector.load %arg9[%c0_13, %c0_14] : memref<1x32xf32, #tpu.memory_space<vmem>>, vector<1x32xf32>
    %16 = vector.broadcast %15 : vector<1x32xf32> to vector<16x32xf32>
    %17 = arith.addf %14, %16 : vector<16x32xf32>
    %18 = vector.shape_cast %6 : vector<16x32xf32> to vector<2x8x32xf32>
    %19 = vector.extract_strided_slice %18 {offsets = [0, 7, 0], sizes = [2, 1, 32], strides = [1, 1, 1]} : vector<2x8x32xf32> to vector<2x1x32xf32>
    %20 = vector.shape_cast %19 : vector<2x1x32xf32> to vector<2x32xf32>
    %21 = arith.truncf %20 : vector<2x32xf32> to vector<2x32xbf16>
    %c0_15 = arith.constant 0 : index
    %c0_16 = arith.constant 0 : index
    %22 = vector.load %arg4[%c0_15, %c0_16] : memref<32x32xbf16, #tpu.memory_space<vmem>>, vector<32x32xbf16>
    %cst_17 = arith.constant dense<0.000000e+00> : vector<2x32xf32>
    %23 = tpu.matmul %21, %22, %cst_17 {dimension_numbers = #tpu.dot_dimension_numbers<[1], [0], [0], [1], [0, 0, 1, 1], [], []>} : vector<2x32xbf16>, vector<32x32xbf16>, vector<2x32xf32> -> vector<2x32xf32>
    %c0_18 = arith.constant 0 : index
    %c0_19 = arith.constant 0 : index
    %24 = vector.load %arg5[%c0_18, %c0_19] : memref<1x32xf32, #tpu.memory_space<vmem>>, vector<1x32xf32>
    %25 = vector.broadcast %24 : vector<1x32xf32> to vector<2x32xf32>
    %26 = arith.addf %23, %25 : vector<2x32xf32>
    %27 = vector.shape_cast %12 : vector<16x32xf32> to vector<2x8x32xf32>
    %28 = vector.shape_cast %26 : vector<2x32xf32> to vector<2x1x32xf32>
    %29 = vector.broadcast %28 : vector<2x1x32xf32> to vector<2x8x32xf32>
    %30 = arith.mulf %27, %29 : vector<2x8x32xf32>
    %31 = vector.shape_cast %30 : vector<2x8x32xf32> to vector<16x32xf32>
    %c0_20 = arith.constant 0 : index
    %c0_21 = arith.constant 0 : index
    %32 = vector.load %arg12[%c0_20, %c0_21] : memref<32x2xf32, #tpu.memory_space<vmem>>, vector<32x2xf32>
    %cst_22 = arith.constant dense<0.000000e+00> : vector<16x2xf32>
    %33 = tpu.matmul %31, %32, %cst_22 {dimension_numbers = #tpu.dot_dimension_numbers<[1], [0], [0], [1], [0, 0, 1, 1], [], []>} : vector<16x32xf32>, vector<32x2xf32>, vector<16x2xf32> -> vector<16x2xf32>
    %34 = vector.shape_cast %33 : vector<16x2xf32> to vector<2x8x2xf32>
    %cst_23 = arith.constant dense<0xFF800000> : vector<2x2xf32>
    %35 = vector.multi_reduction <maximumf>, %34, %cst_23 [1] : vector<2x8x2xf32> to vector<2x2xf32>
    %36 = vector.shape_cast %35 : vector<2x2xf32> to vector<2x1x2xf32>
    %37 = vector.broadcast %36 : vector<2x1x2xf32> to vector<2x8x2xf32>
    %38 = arith.subf %34, %37 : vector<2x8x2xf32>
    %39 = math.exp %38 : vector<2x8x2xf32>
    %cst_24 = arith.constant dense<0.000000e+00> : vector<2x2xf32>
    %40 = vector.multi_reduction <add>, %39, %cst_24 [1] : vector<2x8x2xf32> to vector<2x2xf32>
    %41 = vector.shape_cast %40 : vector<2x2xf32> to vector<2x1x2xf32>
    %42 = vector.broadcast %41 : vector<2x1x2xf32> to vector<2x8x2xf32>
    %43 = arith.divf %39, %42 : vector<2x8x2xf32>
    %44 = vector.shape_cast %43 : vector<2x8x2xf32> to vector<16x2xf32>
    %c0_25 = arith.constant 0 : index
    %c0_26 = arith.constant 0 : index
    %45 = vector.load %arg13[%c0_25, %c0_26] : memref<2x32xf32, #tpu.memory_space<vmem>>, vector<2x32xf32>
    %cst_27 = arith.constant dense<0.000000e+00> : vector<16x32xf32>
    %46 = tpu.matmul %44, %45, %cst_27 {dimension_numbers = #tpu.dot_dimension_numbers<[1], [0], [0], [1], [0, 0, 1, 1], [], []>} : vector<16x2xf32>, vector<2x32xf32>, vector<16x32xf32> -> vector<16x32xf32>
    %47 = arith.mulf %46, %17 : vector<16x32xf32>
    %48 = vector.shape_cast %47 : vector<16x32xf32> to vector<2x8x32xf32>
    %cst_28 = arith.constant dense<0.000000e+00> : vector<2x32xf32>
    %49 = vector.multi_reduction <add>, %48, %cst_28 [1] : vector<2x8x32xf32> to vector<2x32xf32>
    %50 = arith.truncf %49 : vector<2x32xf32> to vector<2x32xbf16>
    %c0_29 = arith.constant 0 : index
    %c0_30 = arith.constant 0 : index
    %51 = vector.load %arg10[%c0_29, %c0_30] : memref<32x32xbf16, #tpu.memory_space<vmem>>, vector<32x32xbf16>
    %cst_31 = arith.constant dense<0.000000e+00> : vector<2x32xf32>
    %52 = tpu.matmul %50, %51, %cst_31 {dimension_numbers = #tpu.dot_dimension_numbers<[1], [0], [0], [1], [0, 0, 1, 1], [], []>} : vector<2x32xbf16>, vector<32x32xbf16>, vector<2x32xf32> -> vector<2x32xf32>
    %c0_32 = arith.constant 0 : index
    %c0_33 = arith.constant 0 : index
    %53 = vector.load %arg11[%c0_32, %c0_33] : memref<1x32xf32, #tpu.memory_space<vmem>>, vector<1x32xf32>
    %54 = vector.broadcast %53 : vector<1x32xf32> to vector<2x32xf32>
    %55 = arith.addf %52, %54 : vector<2x32xf32>
    %56 = vector.shape_cast %6 : vector<16x32xf32> to vector<2x8x32xf32>
    %57 = vector.shape_cast %55 : vector<2x32xf32> to vector<2x1x32xf32>
    %58 = vector.broadcast %57 : vector<2x1x32xf32> to vector<2x8x32xf32>
    %59 = arith.addf %56, %58 : vector<2x8x32xf32>
    %60 = vector.shape_cast %59 : vector<2x8x32xf32> to vector<16x32xf32>
    %c0_34 = arith.constant 0 : index
    %c0_35 = arith.constant 0 : index
    %61 = vector.load %arg14[%c0_34, %c0_35] : memref<1x32xf32, #tpu.memory_space<vmem>>, vector<1x32xf32>
    %c0_36 = arith.constant 0 : index
    %c0_37 = arith.constant 0 : index
    %62 = vector.load %arg15[%c0_36, %c0_37] : memref<1x32xf32, #tpu.memory_space<vmem>>, vector<1x32xf32>
    %cst_38 = arith.constant dense<0.000000e+00> : vector<16xf32>
    %63 = vector.multi_reduction <add>, %60, %cst_38 [1] : vector<16x32xf32> to vector<16xf32>
    %64 = vector.shape_cast %63 : vector<16xf32> to vector<16x1xf32>
    %cst_39 = arith.constant 3.200000e+01 : f32
    %65 = vector.broadcast %cst_39 : f32 to vector<16x1xf32>
    %66 = arith.divf %64, %65 : vector<16x1xf32>
    %67 = vector.broadcast %66 : vector<16x1xf32> to vector<16x32xf32>
    %68 = arith.subf %60, %67 : vector<16x32xf32>
    %69 = arith.mulf %68, %68 : vector<16x32xf32>
    %cst_40 = arith.constant dense<0.000000e+00> : vector<16xf32>
    %70 = vector.multi_reduction <add>, %69, %cst_40 [1] : vector<16x32xf32> to vector<16xf32>
    %71 = vector.shape_cast %70 : vector<16xf32> to vector<16x1xf32>
    %cst_41 = arith.constant 3.200000e+01 : f32
    %72 = vector.broadcast %cst_41 : f32 to vector<16x1xf32>
    %73 = arith.divf %71, %72 : vector<16x1xf32>
    %74 = vector.broadcast %66 : vector<16x1xf32> to vector<16x32xf32>
    %75 = arith.subf %60, %74 : vector<16x32xf32>
    %cst_42 = arith.constant 9.99999974E-6 : f32
    %76 = vector.broadcast %cst_42 : f32 to vector<16x1xf32>
    %77 = arith.addf %73, %76 : vector<16x1xf32>
    %78 = math.rsqrt %77 : vector<16x1xf32>
    %79 = vector.broadcast %78 : vector<16x1xf32> to vector<16x32xf32>
    %80 = arith.mulf %75, %79 : vector<16x32xf32>
    %81 = vector.broadcast %61 : vector<1x32xf32> to vector<16x32xf32>
    %82 = arith.mulf %80, %81 : vector<16x32xf32>
    %83 = vector.broadcast %62 : vector<1x32xf32> to vector<16x32xf32>
    %84 = arith.addf %82, %83 : vector<16x32xf32>
    %85 = arith.truncf %84 : vector<16x32xf32> to vector<16x32xbf16>
    %c0_43 = arith.constant 0 : index
    %c0_44 = arith.constant 0 : index
    %86 = vector.load %arg16[%c0_43, %c0_44] : memref<32x32xbf16, #tpu.memory_space<vmem>>, vector<32x32xbf16>
    %cst_45 = arith.constant dense<0.000000e+00> : vector<16x32xf32>
    %87 = tpu.matmul %85, %86, %cst_45 {dimension_numbers = #tpu.dot_dimension_numbers<[1], [0], [0], [1], [0, 0, 1, 1], [], []>} : vector<16x32xbf16>, vector<32x32xbf16>, vector<16x32xf32> -> vector<16x32xf32>
    %c0_46 = arith.constant 0 : index
    %c0_47 = arith.constant 0 : index
    %88 = vector.load %arg17[%c0_46, %c0_47] : memref<1x32xf32, #tpu.memory_space<vmem>>, vector<1x32xf32>
    %89 = vector.broadcast %88 : vector<1x32xf32> to vector<16x32xf32>
    %90 = arith.addf %87, %89 : vector<16x32xf32>
    %cst_48 = arith.constant 0.000000e+00 : f32
    %91 = vector.broadcast %cst_48 : f32 to vector<16x32xf32>
    %92 = arith.maximumf %90, %91 : vector<16x32xf32>
    %93 = arith.truncf %92 : vector<16x32xf32> to vector<16x32xbf16>
    %c0_49 = arith.constant 0 : index
    %c0_50 = arith.constant 0 : index
    %94 = vector.load %arg18[%c0_49, %c0_50] : memref<32x32xbf16, #tpu.memory_space<vmem>>, vector<32x32xbf16>
    %cst_51 = arith.constant dense<0.000000e+00> : vector<16x32xf32>
    %95 = tpu.matmul %93, %94, %cst_51 {dimension_numbers = #tpu.dot_dimension_numbers<[1], [0], [0], [1], [0, 0, 1, 1], [], []>} : vector<16x32xbf16>, vector<32x32xbf16>, vector<16x32xf32> -> vector<16x32xf32>
    %c0_52 = arith.constant 0 : index
    %c0_53 = arith.constant 0 : index
    %96 = vector.load %arg19[%c0_52, %c0_53] : memref<1x32xf32, #tpu.memory_space<vmem>>, vector<1x32xf32>
    %97 = vector.broadcast %96 : vector<1x32xf32> to vector<16x32xf32>
    %98 = arith.addf %95, %97 : vector<16x32xf32>
    %99 = arith.addf %6, %98 : vector<16x32xf32>
    %c0_54 = arith.constant 0 : index
    %c0_55 = arith.constant 0 : index
    %100 = vector.load %arg20[%c0_54, %c0_55] : memref<1x32xf32, #tpu.memory_space<vmem>>, vector<1x32xf32>
    %c0_56 = arith.constant 0 : index
    %c0_57 = arith.constant 0 : index
    %101 = vector.load %arg21[%c0_56, %c0_57] : memref<1x32xf32, #tpu.memory_space<vmem>>, vector<1x32xf32>
    %cst_58 = arith.constant dense<0.000000e+00> : vector<16xf32>
    %102 = vector.multi_reduction <add>, %99, %cst_58 [1] : vector<16x32xf32> to vector<16xf32>
    %103 = vector.shape_cast %102 : vector<16xf32> to vector<16x1xf32>
    %cst_59 = arith.constant 3.200000e+01 : f32
    %104 = vector.broadcast %cst_59 : f32 to vector<16x1xf32>
    %105 = arith.divf %103, %104 : vector<16x1xf32>
    %106 = vector.broadcast %105 : vector<16x1xf32> to vector<16x32xf32>
    %107 = arith.subf %99, %106 : vector<16x32xf32>
    %108 = arith.mulf %107, %107 : vector<16x32xf32>
    %cst_60 = arith.constant dense<0.000000e+00> : vector<16xf32>
    %109 = vector.multi_reduction <add>, %108, %cst_60 [1] : vector<16x32xf32> to vector<16xf32>
    %110 = vector.shape_cast %109 : vector<16xf32> to vector<16x1xf32>
    %cst_61 = arith.constant 3.200000e+01 : f32
    %111 = vector.broadcast %cst_61 : f32 to vector<16x1xf32>
    %112 = arith.divf %110, %111 : vector<16x1xf32>
    %113 = vector.broadcast %105 : vector<16x1xf32> to vector<16x32xf32>
    %114 = arith.subf %99, %113 : vector<16x32xf32>
    %cst_62 = arith.constant 9.99999974E-6 : f32
    %115 = vector.broadcast %cst_62 : f32 to vector<16x1xf32>
    %116 = arith.addf %112, %115 : vector<16x1xf32>
    %117 = math.rsqrt %116 : vector<16x1xf32>
    %118 = vector.broadcast %117 : vector<16x1xf32> to vector<16x32xf32>
    %119 = arith.mulf %114, %118 : vector<16x32xf32>
    %120 = vector.broadcast %100 : vector<1x32xf32> to vector<16x32xf32>
    %121 = arith.mulf %119, %120 : vector<16x32xf32>
    %122 = vector.broadcast %101 : vector<1x32xf32> to vector<16x32xf32>
    %123 = arith.addf %121, %122 : vector<16x32xf32>
    %c0_63 = arith.constant 0 : index
    %c0_64 = arith.constant 0 : index
    %124 = vector.load %arg22[%c0_63, %c0_64] : memref<16x32xf32, #tpu.memory_space<vmem>>, vector<16x32xf32>
    tpu.vector_store %arg22[%c0_63, %c0_64], %123 {strides = array<i32>} : memref<16x32xf32, #tpu.memory_space<vmem>>, vector<16x32xf32>,
    return
  }
  func.func @transform_0(%arg0: i32) -> (i32, i32) {
    %c0_i32 = arith.constant 0 : i32
    %c0_i32_0 = arith.constant 0 : i32
    %c0_i32_1 = arith.constant 0 : i32
    return %c0_i32, %c0_i32_0 : i32, i32
  }
  func.func @transform_1(%arg0: i32) -> (i32, i32) {
    %c0_i32 = arith.constant 0 : i32
    %c0_i32_0 = arith.constant 0 : i32
    %c0_i32_1 = arith.constant 0 : i32
    return %c0_i32, %c0_i32_0 : i32, i32
  }
  func.func @transform_2(%arg0: i32) -> (i32, i32) {
    %c0_i32 = arith.constant 0 : i32
    %c0_i32_0 = arith.constant 0 : i32
    %c0_i32_1 = arith.constant 0 : i32
    return %c0_i32, %c0_i32_0 : i32, i32
  }
  func.func @transform_3(%arg0: i32) -> (i32, i32) {
    %c0_i32 = arith.constant 0 : i32
    %c0_i32_0 = arith.constant 0 : i32
    %c0_i32_1 = arith.constant 0 : i32
    return %c0_i32, %c0_i32_0 : i32, i32
  }
  func.func @transform_4(%arg0: i32) -> (i32, i32) {
    %c0_i32 = arith.constant 0 : i32
    %c0_i32_0 = arith.constant 0 : i32
    %c0_i32_1 = arith.constant 0 : i32
    return %c0_i32, %c0_i32_0 : i32, i32
  }
  func.func @transform_5(%arg0: i32) -> (i32, i32) {
    %c0_i32 = arith.constant 0 : i32
    %c0_i32_0 = arith.constant 0 : i32
    %c0_i32_1 = arith.constant 0 : i32
    return %c0_i32, %c0_i32_0 : i32, i32
  }
  func.func @transform_6(%arg0: i32) -> (i32, i32) {
    %c0_i32 = arith.constant 0 : i32
    %c0_i32_0 = arith.constant 0 : i32
    %c0_i32_1 = arith.constant 0 : i32
    return %c0_i32, %c0_i32_0 : i32, i32
  }
  func.func @transform_7(%arg0: i32) -> (i32, i32) {
    %c0_i32 = arith.constant 0 : i32
    %c0_i32_0 = arith.constant 0 : i32
    %c0_i32_1 = arith.constant 0 : i32
    return %c0_i32, %c0_i32_0 : i32, i32
  }
  func.func @transform_8(%arg0: i32) -> (i32, i32) {
    %c0_i32 = arith.constant 0 : i32
    %c0_i32_0 = arith.constant 0 : i32
    %c0_i32_1 = arith.constant 0 : i32
    return %c0_i32, %c0_i32_0 : i32, i32
  }
  func.func @transform_9(%arg0: i32) -> (i32, i32) {
    %c0_i32 = arith.constant 0 : i32
    %c0_i32_0 = arith.constant 0 : i32
    %c0_i32_1 = arith.constant 0 : i32
    return %c0_i32, %c0_i32_0 : i32, i32
  }
  func.func @transform_10(%arg0: i32) -> (i32, i32) {
    %c0_i32 = arith.constant 0 : i32
    %c0_i32_0 = arith.constant 0 : i32
    %c0_i32_1 = arith.constant 0 : i32
    return %c0_i32, %c0_i32_0 : i32, i32
  }
  func.func @transform_11(%arg0: i32) -> (i32, i32) {
    %c0_i32 = arith.constant 0 : i32
    %c0_i32_0 = arith.constant 0 : i32
    %c0_i32_1 = arith.constant 0 : i32
    return %c0_i32, %c0_i32_0 : i32, i32
  }
  func.func @transform_12(%arg0: i32) -> (i32, i32) {
    %c0_i32 = arith.constant 0 : i32
    %c0_i32_0 = arith.constant 0 : i32
    %c0_i32_1 = arith.constant 0 : i32
    return %c0_i32, %c0_i32_0 : i32, i32
  }
  func.func @transform_13(%arg0: i32) -> (i32, i32) {
    %c0_i32 = arith.constant 0 : i32
    %c0_i32_0 = arith.constant 0 : i32
    %c0_i32_1 = arith.constant 0 : i32
    return %c0_i32, %c0_i32_0 : i32, i32
  }
  func.func @transform_14(%arg0: i32) -> (i32, i32) {
    %c0_i32 = arith.constant 0 : i32
    %c0_i32_0 = arith.constant 0 : i32
    %c0_i32_1 = arith.constant 0 : i32
    return %c0_i32, %c0_i32_0 : i32, i32
  }
  func.func @transform_15(%arg0: i32) -> (i32, i32) {
    %c0_i32 = arith.constant 0 : i32
    %c0_i32_0 = arith.constant 0 : i32
    %c0_i32_1 = arith.constant 0 : i32
    return %c0_i32, %c0_i32_0 : i32, i32
  }
  func.func @transform_16(%arg0: i32) -> (i32, i32) {
    %c0_i32 = arith.constant 0 : i32
    %c0_i32_0 = arith.constant 0 : i32
    %c0_i32_1 = arith.constant 0 : i32
    return %c0_i32, %c0_i32_0 : i32, i32
  }
  func.func @transform_17(%arg0: i32) -> (i32, i32) {
    %c0_i32 = arith.constant 0 : i32
    %c0_i32_0 = arith.constant 0 : i32
    %c0_i32_1 = arith.constant 0 : i32
    return %c0_i32, %c0_i32_0 : i32, i32
  }
  func.func @transform_18(%arg0: i32) -> (i32, i32) {
    %c0_i32 = arith.constant 0 : i32
    %c0_i32_0 = arith.constant 0 : i32
    %c0_i32_1 = arith.constant 0 : i32
    return %c0_i32, %c0_i32_0 : i32, i32
  }
  func.func @transform_19(%arg0: i32) -> (i32, i32) {
    %c0_i32 = arith.constant 0 : i32
    %c0_i32_0 = arith.constant 0 : i32
    %c0_i32_1 = arith.constant 0 : i32
    return %c0_i32, %c0_i32_0 : i32, i32
  }
  func.func @transform_20(%arg0: i32) -> (i32, i32) {
    %c0_i32 = arith.constant 0 : i32
    %c0_i32_0 = arith.constant 0 : i32
    %c0_i32_1 = arith.constant 0 : i32
    return %c0_i32, %c0_i32_0 : i32, i32
  }
  func.func @transform_21(%arg0: i32) -> (i32, i32) {
    %c0_i32 = arith.constant 0 : i32
    %c0_i32_0 = arith.constant 0 : i32
    %c0_i32_1 = arith.constant 0 : i32
    return %c0_i32, %c0_i32_0 : i32, i32
  }
}

</mosaic_0001>

<bundles_post_ra>
// kernel: tpu_custom_call.1
= control target key start
LH: loop header
LB: loop body
LE: loop exit
PB: predicated region body
PF: predicated region fallthrough
CT: control target
= control target key end

     0   :  { %s1694_s0 = inlined_call_operand.vmem [shape: f32[16,40], index: 0, kind: input, shape index: {}]   ;;  %s1695_s1 = inlined_call_operand.vmem [shape: bf16[40,32], index: 1, kind: input, shape index: {}]   ;;  %s1696_s2 = inlined_call_operand.hbm [shape: f32[1,32], index: 2, kind: input, shape index: {}]   ;;  %s1697_s3 = inlined_call_operand.vmem [shape: bf16[32,32], index: 3, kind: input, shape index: {}]   ;;  %s1698_s4 = inlined_call_operand.hbm [shape: f32[1,32], index: 4, kind: input, shape index: {}]   ;;  %s1699_s5 = inlined_call_operand.vmem [shape: bf16[32,32], index: 5, kind: input, shape index: {}]   ;;  %s1700_s6 = inlined_call_operand.hbm [shape: f32[1,32], index: 6, kind: input, shape index: {}]   ;;  %s1701_s7 = inlined_call_operand.vmem [shape: bf16[32,32], index: 7, kind: input, shape index: {}]   ;;  %s1702_s8 = inlined_call_operand.vmem [shape: f32[1,32], index: 8, kind: input, shape index: {}]   ;;  %s1703_s9 = inlined_call_operand.vmem [shape: bf16[32,32], index: 9, kind: input, shape index: {}]   ;;  %s1704_s10 = inlined_call_operand.hbm [shape: f32[1,32], index: 10, kind: input, shape index: {}]   ;;  %s1705_s11 = inlined_call_operand.vmem [shape: f32[32,2], index: 11, kind: input, shape index: {}]   ;;  %s1706_s12 = inlined_call_operand.vmem [shape: f32[2,32], index: 12, kind: input, shape index: {}]   ;;  %s1707_s13 = inlined_call_operand.vmem [shape: f32[1,32], index: 13, kind: input, shape index: {}]   ;;  %s1708_s14 = inlined_call_operand.vmem [shape: f32[1,32], index: 14, kind: input, shape index: {}]   ;;  %s1709_s15 = inlined_call_operand.vmem [shape: bf16[32,32], index: 15, kind: input, shape index: {}]   ;;  %s1710_s16 = inlined_call_operand.vmem [shape: f32[1,32], index: 16, kind: input, shape index: {}]   ;;  %s1711_s17 = inlined_call_operand.vmem [shape: bf16[32,32], index: 17, kind: input, shape index: {}]   ;;  %s1712_s18 = inlined_call_operand.vmem [shape: f32[1,32], index: 18, kind: input, shape index: {}]   ;;  %s1713_s19 = inlined_call_operand.vmem [shape: f32[1,32], index: 19, kind: input, shape index: {}]   ;;  %s1714_s20 = inlined_call_operand.vmem [shape: f32[1,32], index: 20, kind: input, shape index: {}]   ;;  %s1715_s21 = inlined_call_operand.hbm [shape: f32[16,32], index: 21, kind: output, shape index: {}]  }
   0x1   :  { %1722 = sst [smem:[#allocation15_spill]] %s1694_s0 }
   0x2   :  { %1723 = sst [smem:[#allocation16_spill]] %s1695_s1 }
   0x3   :  { %1724 = sst [smem:[#allocation17_spill]] %s1696_s2 }
   0x4   :  { %1725 = sst [smem:[#allocation18_spill]] %s1697_s3 }
   0x5   :  { %1726 = sst [smem:[#allocation19_spill]] %s1698_s4 }
   0x6   :  { %1727 = sst [smem:[#allocation20_spill]] %s1699_s5 }
   0x7   :  { %26 = vsyncpa [#allocation3], 0 }
   0x8   :  { %27 = vsyncpa [#allocation6], 0 }
   0x9   :  { %28 = vsyncpa [#allocation9], 0 }
   0xa   :  { %29 = vsyncpa [#allocation4], 0  ;;  %s1336_s2 = smov [#allocation5]   ;;  %s1337_s26 = smov [#allocation2]  }
   0xb   :  { %s52_s25 = sshll.u32 %s1336_s2, 4  ;;  %s40_s27 = sshll.u32 %s1337_s26, 4  ;;  %s53_s25 = int_to_ptr.vmem [resolvable:$true] %s52_s25  ;;  %s41_s27 = int_to_ptr.vmem [resolvable:$true] %s40_s27 }
   0xc   :  { %s1728_s29 = sld [smem:[#allocation19_spill]] }
  0x12   :  { %s1218_s0 = scalar_lea.hbm %s1728_s29, 16 }
  0x13   :  { %p1219_p0 = scmp.ne.s32.totalorder %s1728_s29, %s1218_s0  ;;  %p1222_p1 = scmp.lt.u32.totalorder %s1218_s0, %s1728_s29 }
  0x15   :  { %p1224_p2 = pnand %p1222_p1, %p1219_p0 }
  0x17   :  { %1227 = shalt.err (!%p1224_p2)
}
  0x18   :  { %s1228_s23 = scalar_lea.vmem %s53_s25, 16  ;;  %s1232_s1 = scalar_lea.vmem %s53_s25, 32 }
  0x19   :  { %p1229_p3 = scmp.ne.s32.totalorder %s53_s25, %s1228_s23  ;;  %p1233_p4 = scmp.lt.s32.totalorder %s53_s25, %s53_s25 }
  0x1a   :  { %p1234_p5 = scmp.lt.s32.totalorder %s1232_s1, %s1228_s23 }
  0x1c   :  { %p1235_p6 = por %p1234_p5, %p1233_p4 }
  0x1e   :  { %p1236_p7 = pnand %p1235_p6, %p1229_p3 }
  0x20   :  { %1239 = shalt.err (!%p1236_p7)
}
  0x21   :  { %55 = dma.hbm_to_vmem [thread:$0]  %s1728_s29, 16, %s53_s25, [#allocation6]  }
  0x22   :  { %s1729_s28 = sld [smem:[#allocation17_spill]] }
  0x28   :  { %s1240_s4 = scalar_lea.hbm %s1729_s28, 16 }
  0x29   :  { %p1241_p8 = scmp.ne.s32.totalorder %s1729_s28, %s1240_s4  ;;  %p1244_p9 = scmp.lt.u32.totalorder %s1240_s4, %s1729_s28 }
  0x2b   :  { %p1246_p10 = pnand %p1244_p9, %p1241_p8 }
  0x2d   :  { %1249 = shalt.err (!%p1246_p10)
}
  0x2e   :  { %s1250_s23 = scalar_lea.vmem %s41_s27, 16  ;;  %s1254_s1 = scalar_lea.vmem %s41_s27, 32 }
  0x2f   :  { %p1251_p11 = scmp.ne.s32.totalorder %s41_s27, %s1250_s23  ;;  %p1255_p12 = scmp.lt.s32.totalorder %s41_s27, %s41_s27 }
  0x30   :  { %p1256_p13 = scmp.lt.s32.totalorder %s1254_s1, %s1250_s23 }
  0x32   :  { %p1257_p0 = por %p1256_p13, %p1255_p12 }
  0x34   :  { %p1258_p1 = pnand %p1257_p0, %p1251_p11 }
  0x36   :  { %1261 = shalt.err (!%p1258_p1)
}
  0x37   :  { %43 = dma.hbm_to_vmem [thread:$0]  %s1729_s28, 16, %s41_s27, [#allocation3]  }
  0x38   :  { %s1338_s24 = smov [#allocation7]   ;;  %s1339_s26 = smov [#allocation8]  }
  0x39   :  { %s64_s2 = sshll.u32 %s1338_s24, 4  ;;  %s80_s3 = sshll.u32 %s1339_s26, 4  ;;  %s65_s2 = int_to_ptr.vmem [resolvable:$true] %s64_s2  ;;  %s81_s3 = int_to_ptr.vmem [resolvable:$true] %s80_s3 }
  0x3a   :  { %s1262_s0 = scalar_lea.hbm %s1700_s6, 16 }
  0x3b   :  { %p1263_p2 = scmp.ne.s32.totalorder %s1700_s6, %s1262_s0  ;;  %p1266_p3 = scmp.lt.u32.totalorder %s1262_s0, %s1700_s6 }
  0x3d   :  { %p1268_p4 = pnand %p1266_p3, %p1263_p2 }
  0x3f   :  { %1271 = shalt.err (!%p1268_p4)
}
  0x40   :  { %s1272_s27 = scalar_lea.vmem %s65_s2, 16  ;;  %s1276_s28 = scalar_lea.vmem %s65_s2, 32 }
  0x41   :  { %p1273_p5 = scmp.ne.s32.totalorder %s65_s2, %s1272_s27  ;;  %p1277_p6 = scmp.lt.s32.totalorder %s65_s2, %s65_s2 }
  0x42   :  { %p1278_p7 = scmp.lt.s32.totalorder %s1276_s28, %s1272_s27 }
  0x44   :  { %p1279_p8 = por %p1278_p7, %p1277_p6 }
  0x46   :  { %p1280_p9 = pnand %p1279_p8, %p1273_p5 }
  0x48   :  { %1283 = shalt.err (!%p1280_p9)
}
  0x49   :  { %67 = dma.hbm_to_vmem [thread:$0]  %s1700_s6, 16, %s65_s2, [#allocation6]  }
  0x4a   :  { %s1284_s4 = scalar_lea.hbm %s1704_s10, 16 }
  0x4b   :  { %p1285_p10 = scmp.ne.s32.totalorder %s1704_s10, %s1284_s4  ;;  %p1288_p11 = scmp.lt.u32.totalorder %s1284_s4, %s1704_s10 }
  0x4d   :  { %p1290_p12 = pnand %p1288_p11, %p1285_p10 }
  0x4f   :  { %1293 = shalt.err (!%p1290_p12)
}
  0x50   :  { %s1294_s23 = scalar_lea.vmem %s81_s3, 16  ;;  %s1298_s1 = scalar_lea.vmem %s81_s3, 32 }
  0x51   :  { %p1295_p13 = scmp.ne.s32.totalorder %s81_s3, %s1294_s23  ;;  %p1299_p0 = scmp.lt.s32.totalorder %s81_s3, %s81_s3 }
  0x52   :  { %p1300_p1 = scmp.lt.s32.totalorder %s1298_s1, %s1294_s23 }
  0x54   :  { %p1301_p2 = por %p1300_p1, %p1299_p0 }
  0x56   :  { %p1302_p3 = pnand %p1301_p2, %p1295_p13 }
  0x58   :  { %1305 = shalt.err (!%p1302_p3)
}
  0x59   :  { %83 = dma.hbm_to_vmem [thread:$0]  %s1704_s10, 16, %s81_s3, [#allocation9]  }
  0x5a   :  { %1328 = dma.done.wait [#allocation3], 16  }
  0x5b   :  { %1329 = vsyncadd [#allocation3], 4294967280 }
  0x5c   :  { %1330 = dma.done.wait [#allocation6], 32  }
  0x5d   :  { %1331 = vsyncadd [#allocation6], 4294967264 }
  0x5e   :  { %1332 = dma.done.wait [#allocation9], 16  }
  0x5f   :  { %1333 = vsyncadd [#allocation9], 4294967280  ;;  %v1340_v0 = vmov 0.0   ;;  %vm1341_vm0 = vmmov 0   ;;  %s1730_s3 = sld [smem:[#allocation16_spill]]  ;;  %vm151_vm1 = vcmask 1043456   ;;  %v410_v38 = vlaneseq }
  0x60   :  { %1095 = vmatprep.subr.bf16.mxu0 %v1340_v0  ;;  %1101 = vmatprep.mubr.msk.bf16.mxu0 %vm1341_vm0, %v1340_v0  ;;  %vm147_vm2 = vcmask 326656   ;;  %s1731_s30 = sld [smem:[#allocation15_spill]]  ;;  %s1732_s1 = sld [smem:[#allocation20_spill]]  ;;  %v1026_v12 = vld [vmem:[#allocation2] ss:$0 sm:$0xff]  ;;  %vm220_vm3 = vcmask 261120  }
  0x61   :  { %1105 = vmatprep.subr.bf16.mxu1 %v1340_v0  ;;  %1109 = vmatprep.mubr.msk.bf16.mxu1 %vm1341_vm0, %v1340_v0  ;;  %v1193_v20 = vld [vmem:[%s1701_s7] sm:$0xff]   ;;  %v1195_v25 = vld [vmem:[%s1701_s7 + $0x8] sm:$0xff]   ;;  %vm348_vm4 = vcmask 1041409   ;;  %v443_v33 = vld [vmem:[%s1705_s11 + $0x10] sm:$0xff]  ;;  %v1342_v36 = vmov 1966171168  }
  0x62   :  { %v441_v30 = vld [vmem:[%s1705_s11] sm:$0xff]  ;;  %v442_v31 = vld [vmem:[%s1705_s11 + $0x8] sm:$0xff]  ;;  %v444_v34 = vld [vmem:[%s1705_s11 + $0x18] sm:$0xff]  ;;  %v408_v37 = vunpack.c.l.s4 %v1342_v36  ;;  %v411_v43 = vshrl.u32 %v410_v38, 7  ;;  %vm572_vm5 = vcmask 1041408   ;;  %vm526_vm6 = vcmask 15360  }
  0x63   :  { %v1169_v32 = vpack.c.bf16 %v442_v31, %v441_v30  ;;  %v1173_v35 = vpack.c.bf16 %v444_v34, %v443_v33  ;;  %v1039_v45 = vld [vmem:[#allocation5] ss:$0 sm:$0xff]  ;;  %v1031_v57 = vld [vmem:[#allocation7] ss:$0 sm:$0xff]  ;;  %s1343_s11 = smov [#allocation10]  }
  0x64   :  { %v409_v42 = vunpack.c.0.s8 %v408_v37  ;;  %v1586_v54 = vsub.s32 0, %v411_v43  ;;  %s1012_s2 = sshll.u32 %s1343_s11, 4  ;;  %s1013_s2 = int_to_ptr.vmem [resolvable:$true] %s1012_s2 }
  0x65   :  { %v1187_v1 = vld [vmem:[%s1730_s3] sm:$0xff]   ;;  %v1188_v2 = vld [vmem:[%s1730_s3 + $0x8] sm:$0xff]   ;;  %v1189_v3 = vld [vmem:[%s1730_s3 + $0x10] ss:$0 sps:$4 sm:$0xff]   ;;  %s1733_s3 = sld [smem:[#allocation18_spill]]  ;;  %p1311_p5 = scmp.lt.s32.totalorder %s1013_s2, %s1013_s2 }
  0x66   :  { %1096 = vmatpush3.bf16.msra.mxu0 %v1187_v1  ;;  %v153_v4 = vsel %vm151_vm1, %v1189_v3, 0  ;;  %v117_v5 = vld [vmem:[%s1731_s30] sm:$0xff]  ;;  %v118_v6 = vld [vmem:[%s1731_s30 + $0x8] sm:$0xff]  ;;  %v1581_v46 = vsub.s32 %v409_v42, %v411_v43 }
  0x67   :  { %1097 = vmatprep.subr.bf16.mxu0 %v1340_v0  ;;  %v119_v7 = vpack.c.bf16 %v118_v6, %v117_v5  ;;  %v1190_v8 = vld [vmem:[%s1732_s1] sm:$0xff]   ;;  %v1191_v9 = vld [vmem:[%s1732_s1 + $0x8] sm:$0xff]  }
  0x68   :  { %1106 = vmatpush3.bf16.msra.mxu1 %v1190_v8  ;;  %v565_v5 = vld [vmem:[%s1706_s12] sm:$0x3]  ;;  %s1306_s12 = scalar_lea.vmem %s1013_s2, 256 }
  0x69   :  { %1107 = vmatprep.subr.bf16.mxu1 %v1340_v0  ;;  %p1307_p4 = scmp.ne.s32.totalorder %s1013_s2, %s1306_s12  ;;  %p1312_p6 = scmp.lt.s32.totalorder %s1306_s12, %s1306_s12 }
  0x6a   :  { %1098 = vmatpush3.bf16.msra.mxu0 %v1188_v2 }
  0x6b   :  { %1099 = vmatprep.subr.bf16.mxu0 %v1340_v0  ;;  %v1192_v10 = vld [vmem:[%s1733_s3] sm:$0xff]   ;;  %v1194_v11 = vld [vmem:[%s1733_s3 + $0x8] sm:$0xff]   ;;  %p1313_p7 = por %p1312_p6, %p1311_p5 }
  0x6c   :  { %1108 = vmatpush3.bf16.msra.mxu1 %v1191_v9 }
  0x6d   :  { %1113 = vmatprep.subr.bf16.mxu1 %v1340_v0  ;;  %p1314_p8 = pnand %p1313_p7, %p1307_p4 }
  0x6e   :  { %1100 = vmatpush3.bf16.msra.mxu0 %v153_v4 }
  0x6f   :  { %1121 = vmatprep.subr.bf16.mxu0 %v1340_v0 }
  0x71   :  { %1102 = vmatmul.mubr.msk.bf16.vlgmr.msra.gmra.mrb[0].mxu0 %vm147_vm2, %v119_v7 }
  0x72   :  { %1125 = vmatprep.mubr.msk.bf16.mxu0 %vm1341_vm0, %v1340_v0  ;;  %1122 = vmatpush3.bf16.msra.mxu0 %v1192_v10 }
  0x73   :  { %1123 = vmatprep.subr.bf16.mxu0 %v1340_v0 }
  0x76   :  { %1124 = vmatpush3.bf16.msra.mxu0 %v1194_v11 }
  0x77   :  { %1140 = vmatprep.subr.msk.mxu0 %vm572_vm5, %v565_v5 }
 0x144   :  { %v189_v13 = vpop.f32.mrb[0].mxu0 }
 0x145   :  { %v1545_v14 = vadd.f32 %v1026_v12, %v189_v13  ;;  %v1103_v15 = vpop.f32.mrb[1].mxu0 }
 0x146   :  { %v192_v16 = vpop.f32.mrb[2].mxu0 }
 0x147   :  { %v329_v17 = vpack.c.bf16 %v1545_v14, %v1545_v14  ;;  %v1549_v18 = vadd.f32 %v1026_v12, %v192_v16  ;;  %v1104_v19 = vpop.f32.mrb[3].mxu0 }
 0x149   :  { %v344_v21 = vunpack.c.l.b16 %v329_v17  ;;  %v330_v22 = vpack.c.bf16 %v1549_v18, %v1549_v18  ;;  %v196_v23 = vpack.c.bf16 %v1549_v18, %v1545_v14 }
 0x14b   :  { %v345_v24 = vunpack.c.l.b16 %v330_v22  ;;  %1110 = vmatmul.mubr.msk.bf16.vlgmr.msra.gmra.mrb[0].mxu1 %vm220_vm3, %v196_v23  ;;  %v346_v26 = vrot.slane %v344_v21, 7 }
 0x14c   :  { %1114 = vmatpush3.bf16.msra.mxu1 %v1193_v20  ;;  %1117 = vmatprep.mubr.msk.bf16.mxu1 %vm1341_vm0, %v1340_v0 }
 0x14d   :  { %v347_v27 = vrot.slane %v345_v24, 6  ;;  %1115 = vmatprep.subr.bf16.mxu1 %v1340_v0 }
 0x14f   :  { %v349_v28 = vsel %vm348_vm4, %v347_v27, %v346_v26 }
 0x150   :  { %1116 = vmatpush3.bf16.msra.mxu1 %v1195_v25  ;;  %v350_v29 = vpack.c.b16 %v349_v28, %v349_v28 }
 0x151   :  { %1170 = vmatprep.subr.bf16.mxu1 %v1169_v32 }
 0x152   :  { %1126 = vmatmul.mubr.msk.bf16.vlgmr.msra.gmra.mrb[4].mxu0 %vm220_vm3, %v350_v29 }
 0x153   :  { %1118 = vmatmul.mubr.msk.bf16.vlgmr.msra.gmra.mrb[4].mxu1 %vm220_vm3, %v196_v23  ;;  %1141 = vmatpush3.msk.msra.mxu0 %vm572_vm5, %v565_v5 }
 0x154   :  { %1172 = vmatpush3.bf16.msra.mxu1 %v1169_v32  ;;  %1153 = vmatprep.subr.bf16.mxu0 %v1340_v0 }
 0x155   :  { %1174 = vmatprep.subr.bf16.mxu1 %v1173_v35 }
 0x158   :  { %1176 = vmatpush3.bf16.msra.mxu1 %v1173_v35 }
 0x159   :  { %1145 = vmatprep.subr.bf16.mxu1 %v1340_v0 }
 0x21e   :  { %v258_v39 = vpop.f32.mrb[0].mxu1 }
 0x21f   :  { %v1111_v40 = vpop.f32.mrb[1].mxu1  ;;  %v259_v61 = vadd.f32 %v1031_v57, %v258_v39 }
 0x220   :  { %v261_v41 = vpop.f32.mrb[2].mxu1 }
 0x221   :  { %v1112_v44 = vpop.f32.mrb[3].mxu1  ;;  %v262_v1 = vadd.f32 %v1031_v57, %v261_v41 }
 0x225   :  { %v400_v47 = vpop.f32.mrb[4].mxu0 }
 0x226   :  { %v401_v48 = vadd.f32 %v1039_v45, %v400_v47  ;;  %v1583_v49 = vpop.f32.mrb[4].mxu1  ;;  %v1127_v50 = vpop.f32.mrb[5].mxu0 }
 0x227   :  { %v1119_v51 = vpop.f32.mrb[5].mxu1  ;;  %v403_v52 = vpop.f32.mrb[6].mxu0  ;;  %v1196_v50 = vld [vmem:[%s1703_s9] sm:$0xff]  }
 0x228   :  { %v413_v53 = vrot.slane %v401_v48, %v1581_v46  ;;  %v1588_v55 = vpop.f32.mrb[6].mxu1  ;;  %v1128_v56 = vpop.f32.mrb[7].mxu0  ;;  %v1197_v51 = vld [vmem:[%s1703_s9 + $0x8] sm:$0xff]   ;;  %v1035_v52 = vld [vmem:[%s1702_s8] ss:$0 sm:$0xff] }
 0x229   :  { %v1120_v58 = vpop.f32.mrb[7].mxu1  ;;  %v323_v56 = vadd.f32 %v1035_v52, %v1583_v49 }
 0x22a   :  { %v414_v59 = vcombine.high %v413_v53, %v413_v53  ;;  %v421_v60 = vrot.slane %v413_v53, %v1581_v46  ;;  %v326_v53 = vadd.f32 %v1035_v52, %v1588_v55 }
 0x22c   :  { %v428_v62 = vrot.slane %v414_v59, %v1581_v46  ;;  %v432_v63 = vrot.slane %v421_v60, %v1586_v54 }
 0x22e   :  { %v436_v2 = vrot.slane %v428_v62, %v1586_v54  ;;  %v439_v3 = vmul.f32 %v432_v63, %v259_v61 }
 0x230   :  { %v440_v4 = vmul.f32 %v436_v2, %v262_v1  ;;  %1137 = vmatprep.mubr.msk.f32.mxu1 %vm220_vm3, %v439_v3 }
 0x232   :  { %1138 = vmatmul.mubr.msk.f32.vlgmr.msra.gmra.mrb[8].mxu1 %vm220_vm3, %v440_v4 }
 0x233   :  { %1149 = vmatprep.mubr.msk.bf16.mxu1 %vm1341_vm0, %v1340_v0  ;;  %1146 = vmatpush3.bf16.msra.mxu1 %v1196_v50 }
 0x234   :  { %1147 = vmatprep.subr.bf16.mxu1 %v1340_v0 }
 0x237   :  { %1148 = vmatpush3.bf16.msra.mxu1 %v1197_v51 }
 0x238   :  { %1161 = vmatprep.subr.bf16.mxu1 %v1340_v0 }
 0x305   :  { %v1139_v6 = vpop.f32.mrb[8].mxu1 }
 0x306   :  { %v534_v7 = vsel %vm526_vm6, %v1139_v6, -inf  ;;  %v517_v8 = vpop.f32.mrb[9].mxu1 }
 0x307   :  { %v535_v9 = vrot.slane %v534_v7, 4  ;;  %v527_v10 = vsel %vm526_vm6, %v517_v8, -inf }
 0x308   :  { %v528_v11 = vrot.slane %v527_v10, 4 }
 0x309   :  { %v536_v12 = vmax.f32 %v534_v7, %v535_v9 }
 0x30a   :  { %v529_v13 = vmax.f32 %v527_v10, %v528_v11 }
 0x30b   :  { %v537_v15 = vrot.slane %v536_v12, 2 }
 0x30c   :  { %v530_v16 = vrot.slane %v529_v13, 2 }
 0x30d   :  { %v538_v17 = vmax.f32 %v536_v12, %v537_v15 }
 0x30e   :  { %v531_v19 = vmax.f32 %v529_v13, %v530_v16 }
 0x30f   :  { %v539_v20 = vrot.slane %v538_v17, 1 }
 0x310   :  { %v532_v21 = vrot.slane %v531_v19, 1 }
 0x311   :  { %v540_v22 = vmax.f32 %v538_v17, %v539_v20  ;;  %v1048_v17 = vld [vmem:[#allocation8] ss:$0 sm:$0xff] }
 0x312   :  { %v533_v23 = vmax.f32 %v531_v19, %v532_v21 }
 0x313   :  { %v542_v24 = vsub.f32 %v1139_v6, %v540_v22 }
 0x314   :  { %v541_v25 = vsub.f32 %v517_v8, %v533_v23 }
 0x315   :  { %v545_v26 = vmul.f32 1.442695, %v542_v24 }
 0x316   :  { %v543_v27 = vmul.f32 1.442695, %v541_v25 }
 0x317   :  { %1202 = vpow2.f32 %v545_v26 }
 0x318   :  { %1204 = vpow2.f32 %v543_v27 }
 0x321   :  { %v1203_v28 = vpop.eup %1202 }
 0x322   :  { %v1205_v29 = vpop.eup %1204  ;;  %v554_v30 = vsel %vm526_vm6, %v1203_v28, 0.0 }
 0x323   :  { %v555_v31 = vrot.slane %v554_v30, 4  ;;  %v547_v32 = vsel %vm526_vm6, %v1205_v29, 0.0 }
 0x324   :  { %v548_v33 = vrot.slane %v547_v32, 4 }
 0x325   :  { %v556_v34 = vadd.f32 %v555_v31, %v554_v30 }
 0x326   :  { %v549_v35 = vadd.f32 %v548_v33, %v547_v32 }
 0x327   :  { %v557_v36 = vrot.slane %v556_v34, 2 }
 0x328   :  { %v550_v37 = vrot.slane %v549_v35, 2 }
 0x329   :  { %v558_v38 = vadd.f32 %v557_v36, %v556_v34 }
 0x32a   :  { %v551_v39 = vadd.f32 %v550_v37, %v549_v35 }
 0x32b   :  { %v559_v40 = vrot.slane %v558_v38, 1 }
 0x32c   :  { %v552_v41 = vrot.slane %v551_v39, 1 }
 0x32d   :  { %v560_v42 = vadd.f32 %v559_v40, %v558_v38 }
 0x32e   :  { %v553_v43 = vadd.f32 %v552_v41, %v551_v39 }
 0x32f   :  { %1206 = vrcp.f32 %v560_v42  ;;  %v1198_v42 = vld [vmem:[%s1709_s15] sm:$0xff]  }
 0x330   :  { %1208 = vrcp.f32 %v553_v43  ;;  %v1199_v43 = vld [vmem:[%s1709_s15 + $0x8] sm:$0xff]  }
 0x339   :  { %v1207_v44 = vpop.eup %1206 }
 0x33a   :  { %v1209_v45 = vpop.eup %1208  ;;  %v564_v48 = vmul.f32 %v1207_v44, %v1203_v28 }
 0x33b   :  { %v562_v47 = vmul.f32 %v1209_v45, %v1205_v29 }
 0x33d   :  { %1142 = vmatprep.mubr.msk.f32.mxu0 %vm526_vm6, %v562_v47 }
 0x33e   :  { %1143 = vmatmul.mubr.msk.f32.vlgmr.msra.gmra.mrb[8].mxu0 %vm526_vm6, %v564_v48 }
 0x33f   :  { %1157 = vmatprep.mubr.msk.bf16.mxu0 %vm1341_vm0, %v1340_v0  ;;  %1154 = vmatpush3.bf16.msra.mxu0 %v1198_v42 }
 0x340   :  { %1155 = vmatprep.subr.bf16.mxu0 %v1340_v0 }
 0x343   :  { %1156 = vmatpush3.bf16.msra.mxu0 %v1199_v43 }
 0x411   :  { %v1144_v57 = vpop.f32.mrb[8].mxu0 }
 0x412   :  { %v652_v58 = vmul.f32 %v1144_v57, %v326_v53  ;;  %v642_v59 = vpop.f32.mrb[9].mxu0 }
 0x413   :  { %v651_v60 = vmul.f32 %v642_v59, %v323_v56  ;;  %v1052_v56 = vld [vmem:[%s1707_s13] ss:$0 sm:$0xff] }
 0x414   :  { %v660_v61 = vsel %vm220_vm3, %v652_v58, 0.0 }
 0x415   :  { %v661_v62 = vrot.slane %v660_v61, 4  ;;  %v653_v63 = vsel %vm220_vm3, %v651_v60, 0.0  ;;  %v1053_v60 = vld [vmem:[%s1708_s14] ss:$0 sm:$0xff] }
 0x416   :  { %v654_v1 = vrot.slane %v653_v63, 4 }
 0x417   :  { %v662_v2 = vadd.f32 %v661_v62, %v660_v61 }
 0x418   :  { %v655_v3 = vadd.f32 %v654_v1, %v653_v63 }
 0x419   :  { %v663_v4 = vrot.slane %v662_v2, 2 }
 0x41a   :  { %v656_v5 = vrot.slane %v655_v3, 2 }
 0x41b   :  { %v664_v6 = vadd.f32 %v663_v4, %v662_v2  ;;  %v1200_v2 = vld [vmem:[%s1711_s17] sm:$0xff]  }
 0x41c   :  { %v657_v7 = vadd.f32 %v656_v5, %v655_v3  ;;  %v1201_v3 = vld [vmem:[%s1711_s17 + $0x8] sm:$0xff]   ;;  %v1054_v4 = vld [vmem:[%s1710_s16] ss:$0 sm:$0xff] }
 0x41d   :  { %v665_v8 = vrot.slane %v664_v6, 1 }
 0x41e   :  { %v658_v55 = vrot.slane %v657_v7, 1 }
 0x41f   :  { %v666_v9 = vadd.f32 %v665_v8, %v664_v6 }
 0x420   :  { %v659_v49 = vadd.f32 %v658_v55, %v657_v7 }
 0x421   :  { %v668_v10 = vpack.c.bf16 %v666_v9, %v666_v9 }
 0x422   :  { %v667_v11 = vpack.c.bf16 %v659_v49, %v659_v49 }
 0x423   :  { %v683_v12 = vunpack.c.l.b16 %v668_v10 }
 0x424   :  { %v682_v13 = vunpack.c.l.b16 %v667_v11 }
 0x426   :  { %v684_v15 = vsel %vm348_vm4, %v683_v12, %v682_v13 }
 0x427   :  { %v685_v16 = vpack.c.b16 %v684_v15, %v684_v15 }
 0x429   :  { %1150 = vmatmul.mubr.msk.bf16.vlgmr.msra.gmra.mrb[12].mxu1 %vm220_vm3, %v685_v16 }
 0x42a   :  { %1165 = vmatprep.mubr.msk.bf16.mxu1 %vm1341_vm0, %v1340_v0  ;;  %1162 = vmatpush3.bf16.msra.mxu1 %v1200_v2 }
 0x42b   :  { %1163 = vmatprep.subr.bf16.mxu1 %v1340_v0  ;;  %v1058_v0 = vld [vmem:[%s1712_s18] ss:$0 sm:$0xff] }
 0x42e   :  { %1164 = vmatpush3.bf16.msra.mxu1 %v1201_v3 }
 0x4fc   :  { %v735_v19 = vpop.f32.mrb[12].mxu1 }
 0x4fd   :  { %v736_v20 = vadd.f32 %v1048_v17, %v735_v19  ;;  %v1151_v21 = vpop.f32.mrb[13].mxu1 }
 0x4fe   :  { %v738_v22 = vpop.f32.mrb[14].mxu1 }
 0x4ff   :  { %v748_v23 = vrot.slane %v736_v20, %v1581_v46  ;;  %v1152_v24 = vpop.f32.mrb[15].mxu1 }
 0x501   :  { %v749_v25 = vcombine.high %v748_v23, %v748_v23  ;;  %v756_v26 = vrot.slane %v748_v23, %v1581_v46 }
 0x503   :  { %v767_v27 = vrot.slane %v756_v26, %v1586_v54  ;;  %v763_v28 = vrot.slane %v749_v25, %v1581_v46 }
 0x505   :  { %v774_v29 = vadd.f32 %v767_v27, %v1545_v14  ;;  %v771_v30 = vrot.slane %v763_v28, %v1586_v54 }
 0x507   :  { %v778_v31 = vsel %vm220_vm3, %v774_v29, 0.0  ;;  %v775_v32 = vadd.f32 %v771_v30, %v1549_v18 }
 0x508   :  { %779 = vadd.xlane.f32.xlu0 %v778_v31 }
 0x509   :  { %v781_v33 = vsel %vm220_vm3, %v775_v32, 0.0 }
 0x50c   :  { %782 = vadd.xlane.f32.xlu0 %v781_v33 }
 0x595   :  { %v780_v34 = vpop.xlane.xlu0 %779 }
 0x596   :  { %v785_v35 = vmul.f32 0.03125, %v780_v34 }
 0x598   :  { %v787_v36 = vsub.f32 %v774_v29, %v785_v35 }
 0x599   :  { %v783_v37 = vpop.xlane.xlu0 %782 }
 0x59a   :  { %v786_v38 = vmul.f32 0.03125, %v783_v37  ;;  %v789_v39 = vmul.f32 %v787_v36, %v787_v36 }
 0x59c   :  { %v788_v40 = vsub.f32 %v775_v32, %v786_v38  ;;  %v791_v46 = vsel %vm220_vm3, %v789_v39, 0.0  ;;  %v1062_v39 = vld [vmem:[%s1713_s19] ss:$0 sm:$0xff] }
 0x59d   :  { %792 = vadd.xlane.f32.xlu1 %v791_v46 }
 0x59e   :  { %v790_v41 = vmul.f32 %v788_v40, %v788_v40 }
 0x5a0   :  { %v794_v54 = vsel %vm220_vm3, %v790_v41, 0.0  ;;  %v1063_v41 = vld [vmem:[%s1714_s20] ss:$0 sm:$0xff] }
 0x5a1   :  { %795 = vadd.xlane.f32.xlu1 %v794_v54 }
 0x62a   :  { %v793_v44 = vpop.xlane.xlu1 %792 }
 0x62b   :  { %v797_v45 = vmul.f32 0.03125, %v793_v44 }
 0x62d   :  { %v799_v47 = vadd.f32 1e-05, %v797_v45 }
 0x62e   :  { %v796_v48 = vpop.xlane.xlu1 %795 }
 0x62f   :  { %1210 = vrsqrt.f32 %v799_v47  ;;  %v798_v50 = vmul.f32 0.03125, %v796_v48 }
 0x631   :  { %v800_v51 = vadd.f32 1e-05, %v798_v50 }
 0x633   :  { %1212 = vrsqrt.f32 %v800_v51 }
 0x639   :  { %v1211_v52 = vpop.eup %1210 }
 0x63a   :  { %v803_v53 = vmul.f32 %v1211_v52, %v787_v36 }
 0x63c   :  { %v811_v58 = vmul.f32 %v1052_v56, %v803_v53 }
 0x63d   :  { %v1213_v57 = vpop.eup %1212 }
 0x63e   :  { %v804_v59 = vmul.f32 %v1213_v57, %v788_v40  ;;  %v819_v62 = vadd.f32 %v1053_v60, %v811_v58 }
 0x640   :  { %v812_v61 = vmul.f32 %v1052_v56, %v804_v59 }
 0x642   :  { %v820_v63 = vadd.f32 %v1053_v60, %v812_v61 }
 0x644   :  { %v821_v1 = vpack.c.bf16 %v820_v63, %v819_v62 }
 0x646   :  { %1158 = vmatmul.mubr.msk.bf16.vlgmr.msra.gmra.mrb[12].mxu0 %vm220_vm3, %v821_v1 }
 0x719   :  { %v882_v5 = vpop.f32.mrb[12].mxu0 }
 0x71a   :  { %v883_v6 = vadd.f32 %v1054_v4, %v882_v5  ;;  %v1159_v7 = vpop.f32.mrb[13].mxu0 }
 0x71b   :  { %v885_v8 = vpop.f32.mrb[14].mxu0 }
 0x71c   :  { %v886_v55 = vadd.f32 %v1054_v4, %v885_v8  ;;  %v1160_v9 = vpop.f32.mrb[15].mxu0  ;;  %v889_v49 = vmax.f32 %v883_v6, 0.0 }
 0x71e   :  { %v890_v10 = vmax.f32 %v886_v55, 0.0 }
 0x720   :  { %v891_v11 = vpack.c.bf16 %v890_v10, %v889_v49 }
 0x722   :  { %1166 = vmatmul.mubr.msk.bf16.vlgmr.msra.gmra.mrb[16].mxu1 %vm220_vm3, %v891_v11 }
 0x7f5   :  { %v952_v12 = vpop.f32.mrb[16].mxu1 }
 0x7f6   :  { %v953_v13 = vadd.f32 %v1058_v0, %v952_v12  ;;  %v1167_v15 = vpop.f32.mrb[17].mxu1 }
 0x7f7   :  { %v955_v16 = vpop.f32.mrb[18].mxu1 }
 0x7f8   :  { %v956_v17 = vadd.f32 %v1058_v0, %v955_v16  ;;  %v1168_v19 = vpop.f32.mrb[19].mxu1  ;;  %v959_v20 = vadd.f32 %v953_v13, %v1545_v14 }
 0x7fa   :  { %v963_v21 = vsel %vm220_vm3, %v959_v20, 0.0  ;;  %v960_v22 = vadd.f32 %v956_v17, %v1549_v18 }
 0x7fb   :  { %964 = vadd.xlane.f32.xlu0 %v963_v21 }
 0x7fc   :  { %v966_v23 = vsel %vm220_vm3, %v960_v22, 0.0 }
 0x7fd   :  { %967 = vadd.xlane.f32.xlu1 %v966_v23 }
 0x888   :  { %v965_v24 = vpop.xlane.xlu0 %964 }
 0x889   :  { %v969_v25 = vmul.f32 0.03125, %v965_v24 }
 0x88a   :  { %v968_v26 = vpop.xlane.xlu1 %967 }
 0x88b   :  { %v971_v27 = vsub.f32 %v959_v20, %v969_v25  ;;  %v970_v28 = vmul.f32 0.03125, %v968_v26 }
 0x88d   :  { %v972_v29 = vsub.f32 %v960_v22, %v970_v28  ;;  %v973_v30 = vmul.f32 %v971_v27, %v971_v27 }
 0x88f   :  { %v975_v31 = vsel %vm220_vm3, %v973_v30, 0.0  ;;  %v974_v32 = vmul.f32 %v972_v29, %v972_v29 }
 0x890   :  { %976 = vadd.xlane.f32.xlu0 %v975_v31 }
 0x891   :  { %v978_v14 = vsel %vm220_vm3, %v974_v32, 0.0 }
 0x892   :  { %979 = vadd.xlane.f32.xlu1 %v978_v14 }
 0x91d   :  { %v977_v33 = vpop.xlane.xlu0 %976 }
 0x91e   :  { %v981_v18 = vmul.f32 0.03125, %v977_v33 }
 0x91f   :  { %v980_v34 = vpop.xlane.xlu1 %979 }
 0x920   :  { %v983_v35 = vadd.f32 1e-05, %v981_v18  ;;  %v982_v36 = vmul.f32 0.03125, %v980_v34 }
 0x922   :  { %1214 = vrsqrt.f32 %v983_v35  ;;  %v984_v37 = vadd.f32 1e-05, %v982_v36 }
 0x924   :  { %1216 = vrsqrt.f32 %v984_v37 }
 0x92c   :  { %v1215_v38 = vpop.eup %1214 }
 0x92d   :  { %v987_v40 = vmul.f32 %v1215_v38, %v971_v27 }
 0x92e   :  { %v1217_v46 = vpop.eup %1216 }
 0x92f   :  { %v995_v54 = vmul.f32 %v1062_v39, %v987_v40  ;;  %v988_v42 = vmul.f32 %v1217_v46, %v972_v29 }
 0x931   :  { %v996_v43 = vmul.f32 %v1062_v39, %v988_v42  ;;  %v1003_v44 = vadd.f32 %v1063_v41, %v995_v54 }
 0x933   :  { %v1004_v45 = vadd.f32 %v1063_v41, %v996_v43  ;;  %1005 = vst.msk [vmem:[#allocation10] sm:$0xff] %vm220_vm3, %v1003_v44 }
 0x935   :  { %1006 = vst.msk [vmem:[#allocation10 + $0x8] sm:$0xff] %vm220_vm3, %v1004_v45 }
 0x936   :  { %1317 = shalt.err (!%p1314_p8)
}
 0x937   :  { %s1318_s27 = scalar_lea.hbm %s1715_s21, 256 }
 0x938   :  { %p1319_p9 = scmp.ne.s32.totalorder %s1715_s21, %s1318_s27  ;;  %p1322_p10 = scmp.lt.u32.totalorder %s1318_s27, %s1715_s21 }
 0x93a   :  { %p1324_p11 = pnand %p1322_p10, %p1319_p9 }
 0x93c   :  { %1327 = shalt.err (!%p1324_p11)
}
 0x93d   :  { %s1344_s8 = smov 128   ;;  %s1345_s9 = smov 8  }
 0x93e   :  { %1018 = dma.vmem_to_hbm [thread:$0]  %s1013_s2, 256, %s1715_s21, [#allocation4], %s1344_s8, %s1344_s8, %s1345_s9  }
 0x93f   :  { %1334 = dma.done.wait [#allocation4], 256  }
 0x940   :  { %1335 = vsyncadd [#allocation4], 4294967040 }
 0x941   :  { %1022 = vsyncpa [#allocation3], 1 }
 0x942   :  { %1023 = vsyncpa [#allocation6], 1 }
 0x943   :  { %1024 = vsyncpa [#allocation9], 1 }
 0x944   :  { %1025 = vsyncpa [#allocation4], 1 }

</bundles_post_ra>
